<compile_context>
chip_gen: v7x
topology: tpu7x:2x2x1
jax: 0.10.0
libtpu: 0.0.40
codegen_flags: <defaults>
</compile_context>

<pallas_src>
import jax
import jax.numpy as jnp
from jax.experimental import pallas as pl
from jax.experimental.pallas import tpu as pltpu

IN_F = 6          # fc1 input features
HID = 8           # fc1 output / fc2 input features
LANES = 128
MAX_TILE_ROWS = 1024   # 1024 sublane-rows * 128 lanes = 131072 samples / tile


def mlp_kernel(w1_ref, b1_ref, w2_ref, b2_ref, x_ref, o_ref):
    # w1: [6, 8], b1: [8], w2: [8], b2: [1]  (SMEM, resident across grid steps)
    # x:  [IN_F, TR, 128]  (feature, sublane-row, lane) -- batch on sublanes+lanes
    # o:  [TR, 128]        lane- and sublane-dense output slab
    x = x_ref[...]                                       # [6, TR, 128]
    out = jnp.full(o_ref.shape, b2_ref[0], dtype=jnp.float32)
    # Unrolled VPU broadcast-FMA: h_j = tanh(sum_k w1[k,j]*x[k] + b1[j]);
    # out += w2[j]*h_j.  x[k] is a full-vreg [TR,128] slab (no sublane extract).
    for j in range(HID):
        h = jnp.full(o_ref.shape, b1_ref[j], dtype=jnp.float32)
        for k in range(IN_F):
            h = h + w1_ref[k, j] * x[k]
        out = out + w2_ref[j] * jnp.tanh(h)              # tanh -> EUP slot
    o_ref[...] = out


@jax.jit
def baseline_spiral_classifier(x, w1, b1, w2, b2):
    """x: [B, 6] f32; w1: [6, 8]; b1: [8]; w2: [8]; b2: [1] -> [B, 1] f32."""
    B = x.shape[0]
    rows = -(-B // LANES)                                # ceil(B / 128)
    tile_rows = min(MAX_TILE_ROWS, ((rows + 7) // 8) * 8)
    n_blocks = -(-rows // tile_rows)
    rows_p = n_blocks * tile_rows
    Bp = rows_p * LANES

    # Layout plumbing: one fused pad+transpose+reshape copy into a
    # [feature, sublane-row, lane] slab.
    # TODO(synk): produce/store x feature-major upstream so this extra HBM pass
    # disappears entirely for the large-batch streaming case.
    xT = jnp.pad(x, ((0, Bp - B), (0, 0))).T.reshape(IN_F, rows_p, LANES)

    smem = pl.BlockSpec(memory_space=pltpu.MemorySpace.SMEM)
    out = pl.pallas_call(
        mlp_kernel,
        out_shape=jax.ShapeDtypeStruct((rows_p, LANES), jnp.float32),
        grid=(n_blocks,),
        in_specs=[
            smem,                                                   # w1
            smem,                                                   # b1
            smem,                                                   # w2
            smem,                                                   # b2
            pl.BlockSpec((IN_F, tile_rows, LANES), lambda i: (0, i, 0)),  # x tile
        ],
        out_specs=pl.BlockSpec((tile_rows, LANES), lambda i: (i, 0)),
        compiler_params=pltpu.CompilerParams(
            dimension_semantics=("parallel",),
        ),
    )(w1, b1, w2, b2, xT)

    # Padded tail rows are discarded here; they are never reduced over.
    return out.reshape(Bp)[:B].reshape(B, 1)


def init_params(key):
    """PyTorch-default-style init. fc.weight ([out,in]) is stored transposed."""
    k1, k2, k3, k4 = jax.random.split(key, 4)
    lim1 = 1.0 / jnp.sqrt(6.0)
    w1 = jax.random.uniform(k1, (IN_F, HID), jnp.float32, -lim1, lim1)
    b1 = jax.random.uniform(k2, (HID,), jnp.float32, -lim1, lim1)
    lim2 = 1.0 / jnp.sqrt(8.0)
    w2 = jax.random.uniform(k3, (HID,), jnp.float32, -lim2, lim2)
    b2 = jax.random.uniform(k4, (1,), jnp.float32, -lim2, lim2)
    return w1, b1, w2, b2


def reference(x, w1, b1, w2, b2):
    h = jnp.tanh(jnp.dot(x, w1, precision=jax.lax.Precision.HIGHEST) + b1)
    return jnp.dot(h, w2.reshape(HID, 1),
                   precision=jax.lax.Precision.HIGHEST) + b2


if __name__ == "__main__":
    key = jax.random.PRNGKey(0)
    kx, kp = jax.random.split(key)
    w1, b1, w2, b2 = init_params(kp)

    # Small batch (exercises the single-tile + padding path).
    B = 1000
    x = jax.random.normal(kx, (B, IN_F), jnp.float32)
    out = jax.block_until_ready(baseline_spiral_classifier(x, w1, b1, w2, b2))
    ref = reference(x, w1, b1, w2, b2)
    assert out.shape == (B, 1), out.shape
    assert jnp.allclose(out, ref, atol=1e-5, rtol=1e-5), (
        float(jnp.max(jnp.abs(out - ref))))

    # Larger batch (exercises the multi-tile grid + ragged tail path).
    B2 = 300_000
    x2 = jax.random.normal(kx, (B2, IN_F), jnp.float32)
    out2 = jax.block_until_ready(baseline_spiral_classifier(x2, w1, b1, w2, b2))
    ref2 = reference(x2, w1, b1, w2, b2)
    assert out2.shape == (B2, 1), out2.shape
    assert jnp.allclose(out2, ref2, atol=1e-5, rtol=1e-5), (
        float(jnp.max(jnp.abs(out2 - ref2))))

    print("KERNEL_OK")
</pallas_src>

<mosaic_0001>
module attributes {stable_mosaic.version = 11 : i64} {
  func.func @mlp_kernel(%arg0: i32, %arg1: memref<6x8xf32, #tpu.memory_space<smem>>, %arg2: memref<8xf32, #tpu.memory_space<smem>>, %arg3: memref<8xf32, #tpu.memory_space<smem>>, %arg4: memref<1xf32, #tpu.memory_space<smem>>, %arg5: memref<6x8x128xf32, #tpu.memory_space<vmem>>, %arg6: memref<8x128xf32, #tpu.memory_space<vmem>>) attributes {dimension_semantics = [#tpu.dimension_semantics<parallel>], iteration_bounds = array<i64: 1>, scalar_prefetch = 0 : i64, scratch_operands = 0 : i64, tpu.core_type = #tpu.core_type<tc>, window_params = [{transform_indices = @transform_0, window_bounds = array<i64: 6, 8>}, {transform_indices = @transform_1, window_bounds = array<i64: 8>}, {transform_indices = @transform_2, window_bounds = array<i64: 8>}, {transform_indices = @transform_3, window_bounds = array<i64: 1>}, {transform_indices = @transform_4, window_bounds = array<i64: 6, 8, 128>}, {transform_indices = @transform_5, window_bounds = array<i64: 8, 128>}]} {
    %c0 = arith.constant 0 : index
    %c0_0 = arith.constant 0 : index
    %c0_1 = arith.constant 0 : index
    %0 = vector.load %arg5[%c0, %c0_0, %c0_1] : memref<6x8x128xf32, #tpu.memory_space<vmem>>, vector<6x8x128xf32>
    %c0_2 = arith.constant 0 : index
    %1 = memref.load %arg4[%c0_2] : memref<1xf32, #tpu.memory_space<smem>>
    %2 = vector.broadcast %1 : f32 to vector<8x128xf32>
    %c0_3 = arith.constant 0 : index
    %3 = memref.load %arg2[%c0_3] : memref<8xf32, #tpu.memory_space<smem>>
    %4 = vector.broadcast %3 : f32 to vector<8x128xf32>
    %c0_4 = arith.constant 0 : index
    %c0_5 = arith.constant 0 : index
    %5 = memref.load %arg1[%c0_4, %c0_5] : memref<6x8xf32, #tpu.memory_space<smem>>
    %6 = vector.extract_strided_slice %0 {offsets = [0, 0, 0], sizes = [1, 8, 128], strides = [1, 1, 1]} : vector<6x8x128xf32> to vector<1x8x128xf32>
    %7 = vector.shape_cast %6 : vector<1x8x128xf32> to vector<8x128xf32>
    %8 = vector.broadcast %5 : f32 to vector<8x128xf32>
    %9 = arith.mulf %8, %7 : vector<8x128xf32>
    %10 = arith.addf %4, %9 : vector<8x128xf32>
    %c1 = arith.constant 1 : index
    %c0_6 = arith.constant 0 : index
    %11 = memref.load %arg1[%c1, %c0_6] : memref<6x8xf32, #tpu.memory_space<smem>>
    %12 = vector.extract_strided_slice %0 {offsets = [1, 0, 0], sizes = [1, 8, 128], strides = [1, 1, 1]} : vector<6x8x128xf32> to vector<1x8x128xf32>
    %13 = vector.shape_cast %12 : vector<1x8x128xf32> to vector<8x128xf32>
    %14 = vector.broadcast %11 : f32 to vector<8x128xf32>
    %15 = arith.mulf %14, %13 : vector<8x128xf32>
    %16 = arith.addf %10, %15 : vector<8x128xf32>
    %c2 = arith.constant 2 : index
    %c0_7 = arith.constant 0 : index
    %17 = memref.load %arg1[%c2, %c0_7] : memref<6x8xf32, #tpu.memory_space<smem>>
    %18 = vector.extract_strided_slice %0 {offsets = [2, 0, 0], sizes = [1, 8, 128], strides = [1, 1, 1]} : vector<6x8x128xf32> to vector<1x8x128xf32>
    %19 = vector.shape_cast %18 : vector<1x8x128xf32> to vector<8x128xf32>
    %20 = vector.broadcast %17 : f32 to vector<8x128xf32>
    %21 = arith.mulf %20, %19 : vector<8x128xf32>
    %22 = arith.addf %16, %21 : vector<8x128xf32>
    %c3 = arith.constant 3 : index
    %c0_8 = arith.constant 0 : index
    %23 = memref.load %arg1[%c3, %c0_8] : memref<6x8xf32, #tpu.memory_space<smem>>
    %24 = vector.extract_strided_slice %0 {offsets = [3, 0, 0], sizes = [1, 8, 128], strides = [1, 1, 1]} : vector<6x8x128xf32> to vector<1x8x128xf32>
    %25 = vector.shape_cast %24 : vector<1x8x128xf32> to vector<8x128xf32>
    %26 = vector.broadcast %23 : f32 to vector<8x128xf32>
    %27 = arith.mulf %26, %25 : vector<8x128xf32>
    %28 = arith.addf %22, %27 : vector<8x128xf32>
    %c4 = arith.constant 4 : index
    %c0_9 = arith.constant 0 : index
    %29 = memref.load %arg1[%c4, %c0_9] : memref<6x8xf32, #tpu.memory_space<smem>>
    %30 = vector.extract_strided_slice %0 {offsets = [4, 0, 0], sizes = [1, 8, 128], strides = [1, 1, 1]} : vector<6x8x128xf32> to vector<1x8x128xf32>
    %31 = vector.shape_cast %30 : vector<1x8x128xf32> to vector<8x128xf32>
    %32 = vector.broadcast %29 : f32 to vector<8x128xf32>
    %33 = arith.mulf %32, %31 : vector<8x128xf32>
    %34 = arith.addf %28, %33 : vector<8x128xf32>
    %c5 = arith.constant 5 : index
    %c0_10 = arith.constant 0 : index
    %35 = memref.load %arg1[%c5, %c0_10] : memref<6x8xf32, #tpu.memory_space<smem>>
    %36 = vector.extract_strided_slice %0 {offsets = [5, 0, 0], sizes = [1, 8, 128], strides = [1, 1, 1]} : vector<6x8x128xf32> to vector<1x8x128xf32>
    %37 = vector.shape_cast %36 : vector<1x8x128xf32> to vector<8x128xf32>
    %38 = vector.broadcast %35 : f32 to vector<8x128xf32>
    %39 = arith.mulf %38, %37 : vector<8x128xf32>
    %40 = arith.addf %34, %39 : vector<8x128xf32>
    %c0_11 = arith.constant 0 : index
    %41 = memref.load %arg3[%c0_11] : memref<8xf32, #tpu.memory_space<smem>>
    %42 = math.tanh %40 : vector<8x128xf32>
    %43 = vector.broadcast %41 : f32 to vector<8x128xf32>
    %44 = arith.mulf %43, %42 : vector<8x128xf32>
    %45 = arith.addf %2, %44 : vector<8x128xf32>
    %c1_12 = arith.constant 1 : index
    %46 = memref.load %arg2[%c1_12] : memref<8xf32, #tpu.memory_space<smem>>
    %47 = vector.broadcast %46 : f32 to vector<8x128xf32>
    %c0_13 = arith.constant 0 : index
    %c1_14 = arith.constant 1 : index
    %48 = memref.load %arg1[%c0_13, %c1_14] : memref<6x8xf32, #tpu.memory_space<smem>>
    %49 = vector.extract_strided_slice %0 {offsets = [0, 0, 0], sizes = [1, 8, 128], strides = [1, 1, 1]} : vector<6x8x128xf32> to vector<1x8x128xf32>
    %50 = vector.shape_cast %49 : vector<1x8x128xf32> to vector<8x128xf32>
    %51 = vector.broadcast %48 : f32 to vector<8x128xf32>
    %52 = arith.mulf %51, %50 : vector<8x128xf32>
    %53 = arith.addf %47, %52 : vector<8x128xf32>
    %c1_15 = arith.constant 1 : index
    %c1_16 = arith.constant 1 : index
    %54 = memref.load %arg1[%c1_15, %c1_16] : memref<6x8xf32, #tpu.memory_space<smem>>
    %55 = vector.extract_strided_slice %0 {offsets = [1, 0, 0], sizes = [1, 8, 128], strides = [1, 1, 1]} : vector<6x8x128xf32> to vector<1x8x128xf32>
    %56 = vector.shape_cast %55 : vector<1x8x128xf32> to vector<8x128xf32>
    %57 = vector.broadcast %54 : f32 to vector<8x128xf32>
    %58 = arith.mulf %57, %56 : vector<8x128xf32>
    %59 = arith.addf %53, %58 : vector<8x128xf32>
    %c2_17 = arith.constant 2 : index
    %c1_18 = arith.constant 1 : index
    %60 = memref.load %arg1[%c2_17, %c1_18] : memref<6x8xf32, #tpu.memory_space<smem>>
    %61 = vector.extract_strided_slice %0 {offsets = [2, 0, 0], sizes = [1, 8, 128], strides = [1, 1, 1]} : vector<6x8x128xf32> to vector<1x8x128xf32>
    %62 = vector.shape_cast %61 : vector<1x8x128xf32> to vector<8x128xf32>
    %63 = vector.broadcast %60 : f32 to vector<8x128xf32>
    %64 = arith.mulf %63, %62 : vector<8x128xf32>
    %65 = arith.addf %59, %64 : vector<8x128xf32>
    %c3_19 = arith.constant 3 : index
    %c1_20 = arith.constant 1 : index
    %66 = memref.load %arg1[%c3_19, %c1_20] : memref<6x8xf32, #tpu.memory_space<smem>>
    %67 = vector.extract_strided_slice %0 {offsets = [3, 0, 0], sizes = [1, 8, 128], strides = [1, 1, 1]} : vector<6x8x128xf32> to vector<1x8x128xf32>
    %68 = vector.shape_cast %67 : vector<1x8x128xf32> to vector<8x128xf32>
    %69 = vector.broadcast %66 : f32 to vector<8x128xf32>
    %70 = arith.mulf %69, %68 : vector<8x128xf32>
    %71 = arith.addf %65, %70 : vector<8x128xf32>
    %c4_21 = arith.constant 4 : index
    %c1_22 = arith.constant 1 : index
    %72 = memref.load %arg1[%c4_21, %c1_22] : memref<6x8xf32, #tpu.memory_space<smem>>
    %73 = vector.extract_strided_slice %0 {offsets = [4, 0, 0], sizes = [1, 8, 128], strides = [1, 1, 1]} : vector<6x8x128xf32> to vector<1x8x128xf32>
    %74 = vector.shape_cast %73 : vector<1x8x128xf32> to vector<8x128xf32>
    %75 = vector.broadcast %72 : f32 to vector<8x128xf32>
    %76 = arith.mulf %75, %74 : vector<8x128xf32>
    %77 = arith.addf %71, %76 : vector<8x128xf32>
    %c5_23 = arith.constant 5 : index
    %c1_24 = arith.constant 1 : index
    %78 = memref.load %arg1[%c5_23, %c1_24] : memref<6x8xf32, #tpu.memory_space<smem>>
    %79 = vector.extract_strided_slice %0 {offsets = [5, 0, 0], sizes = [1, 8, 128], strides = [1, 1, 1]} : vector<6x8x128xf32> to vector<1x8x128xf32>
    %80 = vector.shape_cast %79 : vector<1x8x128xf32> to vector<8x128xf32>
    %81 = vector.broadcast %78 : f32 to vector<8x128xf32>
    %82 = arith.mulf %81, %80 : vector<8x128xf32>
    %83 = arith.addf %77, %82 : vector<8x128xf32>
    %c1_25 = arith.constant 1 : index
    %84 = memref.load %arg3[%c1_25] : memref<8xf32, #tpu.memory_space<smem>>
    %85 = math.tanh %83 : vector<8x128xf32>
    %86 = vector.broadcast %84 : f32 to vector<8x128xf32>
    %87 = arith.mulf %86, %85 : vector<8x128xf32>
    %88 = arith.addf %45, %87 : vector<8x128xf32>
    %c2_26 = arith.constant 2 : index
    %89 = memref.load %arg2[%c2_26] : memref<8xf32, #tpu.memory_space<smem>>
    %90 = vector.broadcast %89 : f32 to vector<8x128xf32>
    %c0_27 = arith.constant 0 : index
    %c2_28 = arith.constant 2 : index
    %91 = memref.load %arg1[%c0_27, %c2_28] : memref<6x8xf32, #tpu.memory_space<smem>>
    %92 = vector.extract_strided_slice %0 {offsets = [0, 0, 0], sizes = [1, 8, 128], strides = [1, 1, 1]} : vector<6x8x128xf32> to vector<1x8x128xf32>
    %93 = vector.shape_cast %92 : vector<1x8x128xf32> to vector<8x128xf32>
    %94 = vector.broadcast %91 : f32 to vector<8x128xf32>
    %95 = arith.mulf %94, %93 : vector<8x128xf32>
    %96 = arith.addf %90, %95 : vector<8x128xf32>
    %c1_29 = arith.constant 1 : index
    %c2_30 = arith.constant 2 : index
    %97 = memref.load %arg1[%c1_29, %c2_30] : memref<6x8xf32, #tpu.memory_space<smem>>
    %98 = vector.extract_strided_slice %0 {offsets = [1, 0, 0], sizes = [1, 8, 128], strides = [1, 1, 1]} : vector<6x8x128xf32> to vector<1x8x128xf32>
    %99 = vector.shape_cast %98 : vector<1x8x128xf32> to vector<8x128xf32>
    %100 = vector.broadcast %97 : f32 to vector<8x128xf32>
    %101 = arith.mulf %100, %99 : vector<8x128xf32>
    %102 = arith.addf %96, %101 : vector<8x128xf32>
    %c2_31 = arith.constant 2 : index
    %c2_32 = arith.constant 2 : index
    %103 = memref.load %arg1[%c2_31, %c2_32] : memref<6x8xf32, #tpu.memory_space<smem>>
    %104 = vector.extract_strided_slice %0 {offsets = [2, 0, 0], sizes = [1, 8, 128], strides = [1, 1, 1]} : vector<6x8x128xf32> to vector<1x8x128xf32>
    %105 = vector.shape_cast %104 : vector<1x8x128xf32> to vector<8x128xf32>
    %106 = vector.broadcast %103 : f32 to vector<8x128xf32>
    %107 = arith.mulf %106, %105 : vector<8x128xf32>
    %108 = arith.addf %102, %107 : vector<8x128xf32>
    %c3_33 = arith.constant 3 : index
    %c2_34 = arith.constant 2 : index
    %109 = memref.load %arg1[%c3_33, %c2_34] : memref<6x8xf32, #tpu.memory_space<smem>>
    %110 = vector.extract_strided_slice %0 {offsets = [3, 0, 0], sizes = [1, 8, 128], strides = [1, 1, 1]} : vector<6x8x128xf32> to vector<1x8x128xf32>
    %111 = vector.shape_cast %110 : vector<1x8x128xf32> to vector<8x128xf32>
    %112 = vector.broadcast %109 : f32 to vector<8x128xf32>
    %113 = arith.mulf %112, %111 : vector<8x128xf32>
    %114 = arith.addf %108, %113 : vector<8x128xf32>
    %c4_35 = arith.constant 4 : index
    %c2_36 = arith.constant 2 : index
    %115 = memref.load %arg1[%c4_35, %c2_36] : memref<6x8xf32, #tpu.memory_space<smem>>
    %116 = vector.extract_strided_slice %0 {offsets = [4, 0, 0], sizes = [1, 8, 128], strides = [1, 1, 1]} : vector<6x8x128xf32> to vector<1x8x128xf32>
    %117 = vector.shape_cast %116 : vector<1x8x128xf32> to vector<8x128xf32>
    %118 = vector.broadcast %115 : f32 to vector<8x128xf32>
    %119 = arith.mulf %118, %117 : vector<8x128xf32>
    %120 = arith.addf %114, %119 : vector<8x128xf32>
    %c5_37 = arith.constant 5 : index
    %c2_38 = arith.constant 2 : index
    %121 = memref.load %arg1[%c5_37, %c2_38] : memref<6x8xf32, #tpu.memory_space<smem>>
    %122 = vector.extract_strided_slice %0 {offsets = [5, 0, 0], sizes = [1, 8, 128], strides = [1, 1, 1]} : vector<6x8x128xf32> to vector<1x8x128xf32>
    %123 = vector.shape_cast %122 : vector<1x8x128xf32> to vector<8x128xf32>
    %124 = vector.broadcast %121 : f32 to vector<8x128xf32>
    %125 = arith.mulf %124, %123 : vector<8x128xf32>
    %126 = arith.addf %120, %125 : vector<8x128xf32>
    %c2_39 = arith.constant 2 : index
    %127 = memref.load %arg3[%c2_39] : memref<8xf32, #tpu.memory_space<smem>>
    %128 = math.tanh %126 : vector<8x128xf32>
    %129 = vector.broadcast %127 : f32 to vector<8x128xf32>
    %130 = arith.mulf %129, %128 : vector<8x128xf32>
    %131 = arith.addf %88, %130 : vector<8x128xf32>
    %c3_40 = arith.constant 3 : index
    %132 = memref.load %arg2[%c3_40] : memref<8xf32, #tpu.memory_space<smem>>
    %133 = vector.broadcast %132 : f32 to vector<8x128xf32>
    %c0_41 = arith.constant 0 : index
    %c3_42 = arith.constant 3 : index
    %134 = memref.load %arg1[%c0_41, %c3_42] : memref<6x8xf32, #tpu.memory_space<smem>>
    %135 = vector.extract_strided_slice %0 {offsets = [0, 0, 0], sizes = [1, 8, 128], strides = [1, 1, 1]} : vector<6x8x128xf32> to vector<1x8x128xf32>
    %136 = vector.shape_cast %135 : vector<1x8x128xf32> to vector<8x128xf32>
    %137 = vector.broadcast %134 : f32 to vector<8x128xf32>
    %138 = arith.mulf %137, %136 : vector<8x128xf32>
    %139 = arith.addf %133, %138 : vector<8x128xf32>
    %c1_43 = arith.constant 1 : index
    %c3_44 = arith.constant 3 : index
    %140 = memref.load %arg1[%c1_43, %c3_44] : memref<6x8xf32, #tpu.memory_space<smem>>
    %141 = vector.extract_strided_slice %0 {offsets = [1, 0, 0], sizes = [1, 8, 128], strides = [1, 1, 1]} : vector<6x8x128xf32> to vector<1x8x128xf32>
    %142 = vector.shape_cast %141 : vector<1x8x128xf32> to vector<8x128xf32>
    %143 = vector.broadcast %140 : f32 to vector<8x128xf32>
    %144 = arith.mulf %143, %142 : vector<8x128xf32>
    %145 = arith.addf %139, %144 : vector<8x128xf32>
    %c2_45 = arith.constant 2 : index
    %c3_46 = arith.constant 3 : index
    %146 = memref.load %arg1[%c2_45, %c3_46] : memref<6x8xf32, #tpu.memory_space<smem>>
    %147 = vector.extract_strided_slice %0 {offsets = [2, 0, 0], sizes = [1, 8, 128], strides = [1, 1, 1]} : vector<6x8x128xf32> to vector<1x8x128xf32>
    %148 = vector.shape_cast %147 : vector<1x8x128xf32> to vector<8x128xf32>
    %149 = vector.broadcast %146 : f32 to vector<8x128xf32>
    %150 = arith.mulf %149, %148 : vector<8x128xf32>
    %151 = arith.addf %145, %150 : vector<8x128xf32>
    %c3_47 = arith.constant 3 : index
    %c3_48 = arith.constant 3 : index
    %152 = memref.load %arg1[%c3_47, %c3_48] : memref<6x8xf32, #tpu.memory_space<smem>>
    %153 = vector.extract_strided_slice %0 {offsets = [3, 0, 0], sizes = [1, 8, 128], strides = [1, 1, 1]} : vector<6x8x128xf32> to vector<1x8x128xf32>
    %154 = vector.shape_cast %153 : vector<1x8x128xf32> to vector<8x128xf32>
    %155 = vector.broadcast %152 : f32 to vector<8x128xf32>
    %156 = arith.mulf %155, %154 : vector<8x128xf32>
    %157 = arith.addf %151, %156 : vector<8x128xf32>
    %c4_49 = arith.constant 4 : index
    %c3_50 = arith.constant 3 : index
    %158 = memref.load %arg1[%c4_49, %c3_50] : memref<6x8xf32, #tpu.memory_space<smem>>
    %159 = vector.extract_strided_slice %0 {offsets = [4, 0, 0], sizes = [1, 8, 128], strides = [1, 1, 1]} : vector<6x8x128xf32> to vector<1x8x128xf32>
    %160 = vector.shape_cast %159 : vector<1x8x128xf32> to vector<8x128xf32>
    %161 = vector.broadcast %158 : f32 to vector<8x128xf32>
    %162 = arith.mulf %161, %160 : vector<8x128xf32>
    %163 = arith.addf %157, %162 : vector<8x128xf32>
    %c5_51 = arith.constant 5 : index
    %c3_52 = arith.constant 3 : index
    %164 = memref.load %arg1[%c5_51, %c3_52] : memref<6x8xf32, #tpu.memory_space<smem>>
    %165 = vector.extract_strided_slice %0 {offsets = [5, 0, 0], sizes = [1, 8, 128], strides = [1, 1, 1]} : vector<6x8x128xf32> to vector<1x8x128xf32>
    %166 = vector.shape_cast %165 : vector<1x8x128xf32> to vector<8x128xf32>
    %167 = vector.broadcast %164 : f32 to vector<8x128xf32>
    %168 = arith.mulf %167, %166 : vector<8x128xf32>
    %169 = arith.addf %163, %168 : vector<8x128xf32>
    %c3_53 = arith.constant 3 : index
    %170 = memref.load %arg3[%c3_53] : memref<8xf32, #tpu.memory_space<smem>>
    %171 = math.tanh %169 : vector<8x128xf32>
    %172 = vector.broadcast %170 : f32 to vector<8x128xf32>
    %173 = arith.mulf %172, %171 : vector<8x128xf32>
    %174 = arith.addf %131, %173 : vector<8x128xf32>
    %c4_54 = arith.constant 4 : index
    %175 = memref.load %arg2[%c4_54] : memref<8xf32, #tpu.memory_space<smem>>
    %176 = vector.broadcast %175 : f32 to vector<8x128xf32>
    %c0_55 = arith.constant 0 : index
    %c4_56 = arith.constant 4 : index
    %177 = memref.load %arg1[%c0_55, %c4_56] : memref<6x8xf32, #tpu.memory_space<smem>>
    %178 = vector.extract_strided_slice %0 {offsets = [0, 0, 0], sizes = [1, 8, 128], strides = [1, 1, 1]} : vector<6x8x128xf32> to vector<1x8x128xf32>
    %179 = vector.shape_cast %178 : vector<1x8x128xf32> to vector<8x128xf32>
    %180 = vector.broadcast %177 : f32 to vector<8x128xf32>
    %181 = arith.mulf %180, %179 : vector<8x128xf32>
    %182 = arith.addf %176, %181 : vector<8x128xf32>
    %c1_57 = arith.constant 1 : index
    %c4_58 = arith.constant 4 : index
    %183 = memref.load %arg1[%c1_57, %c4_58] : memref<6x8xf32, #tpu.memory_space<smem>>
    %184 = vector.extract_strided_slice %0 {offsets = [1, 0, 0], sizes = [1, 8, 128], strides = [1, 1, 1]} : vector<6x8x128xf32> to vector<1x8x128xf32>
    %185 = vector.shape_cast %184 : vector<1x8x128xf32> to vector<8x128xf32>
    %186 = vector.broadcast %183 : f32 to vector<8x128xf32>
    %187 = arith.mulf %186, %185 : vector<8x128xf32>
    %188 = arith.addf %182, %187 : vector<8x128xf32>
    %c2_59 = arith.constant 2 : index
    %c4_60 = arith.constant 4 : index
    %189 = memref.load %arg1[%c2_59, %c4_60] : memref<6x8xf32, #tpu.memory_space<smem>>
    %190 = vector.extract_strided_slice %0 {offsets = [2, 0, 0], sizes = [1, 8, 128], strides = [1, 1, 1]} : vector<6x8x128xf32> to vector<1x8x128xf32>
    %191 = vector.shape_cast %190 : vector<1x8x128xf32> to vector<8x128xf32>
    %192 = vector.broadcast %189 : f32 to vector<8x128xf32>
    %193 = arith.mulf %192, %191 : vector<8x128xf32>
    %194 = arith.addf %188, %193 : vector<8x128xf32>
    %c3_61 = arith.constant 3 : index
    %c4_62 = arith.constant 4 : index
    %195 = memref.load %arg1[%c3_61, %c4_62] : memref<6x8xf32, #tpu.memory_space<smem>>
    %196 = vector.extract_strided_slice %0 {offsets = [3, 0, 0], sizes = [1, 8, 128], strides = [1, 1, 1]} : vector<6x8x128xf32> to vector<1x8x128xf32>
    %197 = vector.shape_cast %196 : vector<1x8x128xf32> to vector<8x128xf32>
    %198 = vector.broadcast %195 : f32 to vector<8x128xf32>
    %199 = arith.mulf %198, %197 : vector<8x128xf32>
    %200 = arith.addf %194, %199 : vector<8x128xf32>
    %c4_63 = arith.constant 4 : index
    %c4_64 = arith.constant 4 : index
    %201 = memref.load %arg1[%c4_63, %c4_64] : memref<6x8xf32, #tpu.memory_space<smem>>
    %202 = vector.extract_strided_slice %0 {offsets = [4, 0, 0], sizes = [1, 8, 128], strides = [1, 1, 1]} : vector<6x8x128xf32> to vector<1x8x128xf32>
    %203 = vector.shape_cast %202 : vector<1x8x128xf32> to vector<8x128xf32>
    %204 = vector.broadcast %201 : f32 to vector<8x128xf32>
    %205 = arith.mulf %204, %203 : vector<8x128xf32>
    %206 = arith.addf %200, %205 : vector<8x128xf32>
    %c5_65 = arith.constant 5 : index
    %c4_66 = arith.constant 4 : index
    %207 = memref.load %arg1[%c5_65, %c4_66] : memref<6x8xf32, #tpu.memory_space<smem>>
    %208 = vector.extract_strided_slice %0 {offsets = [5, 0, 0], sizes = [1, 8, 128], strides = [1, 1, 1]} : vector<6x8x128xf32> to vector<1x8x128xf32>
    %209 = vector.shape_cast %208 : vector<1x8x128xf32> to vector<8x128xf32>
    %210 = vector.broadcast %207 : f32 to vector<8x128xf32>
    %211 = arith.mulf %210, %209 : vector<8x128xf32>
    %212 = arith.addf %206, %211 : vector<8x128xf32>
    %c4_67 = arith.constant 4 : index
    %213 = memref.load %arg3[%c4_67] : memref<8xf32, #tpu.memory_space<smem>>
    %214 = math.tanh %212 : vector<8x128xf32>
    %215 = vector.broadcast %213 : f32 to vector<8x128xf32>
    %216 = arith.mulf %215, %214 : vector<8x128xf32>
    %217 = arith.addf %174, %216 : vector<8x128xf32>
    %c5_68 = arith.constant 5 : index
    %218 = memref.load %arg2[%c5_68] : memref<8xf32, #tpu.memory_space<smem>>
    %219 = vector.broadcast %218 : f32 to vector<8x128xf32>
    %c0_69 = arith.constant 0 : index
    %c5_70 = arith.constant 5 : index
    %220 = memref.load %arg1[%c0_69, %c5_70] : memref<6x8xf32, #tpu.memory_space<smem>>
    %221 = vector.extract_strided_slice %0 {offsets = [0, 0, 0], sizes = [1, 8, 128], strides = [1, 1, 1]} : vector<6x8x128xf32> to vector<1x8x128xf32>
    %222 = vector.shape_cast %221 : vector<1x8x128xf32> to vector<8x128xf32>
    %223 = vector.broadcast %220 : f32 to vector<8x128xf32>
    %224 = arith.mulf %223, %222 : vector<8x128xf32>
    %225 = arith.addf %219, %224 : vector<8x128xf32>
    %c1_71 = arith.constant 1 : index
    %c5_72 = arith.constant 5 : index
    %226 = memref.load %arg1[%c1_71, %c5_72] : memref<6x8xf32, #tpu.memory_space<smem>>
    %227 = vector.extract_strided_slice %0 {offsets = [1, 0, 0], sizes = [1, 8, 128], strides = [1, 1, 1]} : vector<6x8x128xf32> to vector<1x8x128xf32>
    %228 = vector.shape_cast %227 : vector<1x8x128xf32> to vector<8x128xf32>
    %229 = vector.broadcast %226 : f32 to vector<8x128xf32>
    %230 = arith.mulf %229, %228 : vector<8x128xf32>
    %231 = arith.addf %225, %230 : vector<8x128xf32>
    %c2_73 = arith.constant 2 : index
    %c5_74 = arith.constant 5 : index
    %232 = memref.load %arg1[%c2_73, %c5_74] : memref<6x8xf32, #tpu.memory_space<smem>>
    %233 = vector.extract_strided_slice %0 {offsets = [2, 0, 0], sizes = [1, 8, 128], strides = [1, 1, 1]} : vector<6x8x128xf32> to vector<1x8x128xf32>
    %234 = vector.shape_cast %233 : vector<1x8x128xf32> to vector<8x128xf32>
    %235 = vector.broadcast %232 : f32 to vector<8x128xf32>
    %236 = arith.mulf %235, %234 : vector<8x128xf32>
    %237 = arith.addf %231, %236 : vector<8x128xf32>
    %c3_75 = arith.constant 3 : index
    %c5_76 = arith.constant 5 : index
    %238 = memref.load %arg1[%c3_75, %c5_76] : memref<6x8xf32, #tpu.memory_space<smem>>
    %239 = vector.extract_strided_slice %0 {offsets = [3, 0, 0], sizes = [1, 8, 128], strides = [1, 1, 1]} : vector<6x8x128xf32> to vector<1x8x128xf32>
    %240 = vector.shape_cast %239 : vector<1x8x128xf32> to vector<8x128xf32>
    %241 = vector.broadcast %238 : f32 to vector<8x128xf32>
    %242 = arith.mulf %241, %240 : vector<8x128xf32>
    %243 = arith.addf %237, %242 : vector<8x128xf32>
    %c4_77 = arith.constant 4 : index
    %c5_78 = arith.constant 5 : index
    %244 = memref.load %arg1[%c4_77, %c5_78] : memref<6x8xf32, #tpu.memory_space<smem>>
    %245 = vector.extract_strided_slice %0 {offsets = [4, 0, 0], sizes = [1, 8, 128], strides = [1, 1, 1]} : vector<6x8x128xf32> to vector<1x8x128xf32>
    %246 = vector.shape_cast %245 : vector<1x8x128xf32> to vector<8x128xf32>
    %247 = vector.broadcast %244 : f32 to vector<8x128xf32>
    %248 = arith.mulf %247, %246 : vector<8x128xf32>
    %249 = arith.addf %243, %248 : vector<8x128xf32>
    %c5_79 = arith.constant 5 : index
    %c5_80 = arith.constant 5 : index
    %250 = memref.load %arg1[%c5_79, %c5_80] : memref<6x8xf32, #tpu.memory_space<smem>>
    %251 = vector.extract_strided_slice %0 {offsets = [5, 0, 0], sizes = [1, 8, 128], strides = [1, 1, 1]} : vector<6x8x128xf32> to vector<1x8x128xf32>
    %252 = vector.shape_cast %251 : vector<1x8x128xf32> to vector<8x128xf32>
    %253 = vector.broadcast %250 : f32 to vector<8x128xf32>
    %254 = arith.mulf %253, %252 : vector<8x128xf32>
    %255 = arith.addf %249, %254 : vector<8x128xf32>
    %c5_81 = arith.constant 5 : index
    %256 = memref.load %arg3[%c5_81] : memref<8xf32, #tpu.memory_space<smem>>
    %257 = math.tanh %255 : vector<8x128xf32>
    %258 = vector.broadcast %256 : f32 to vector<8x128xf32>
    %259 = arith.mulf %258, %257 : vector<8x128xf32>
    %260 = arith.addf %217, %259 : vector<8x128xf32>
    %c6 = arith.constant 6 : index
    %261 = memref.load %arg2[%c6] : memref<8xf32, #tpu.memory_space<smem>>
    %262 = vector.broadcast %261 : f32 to vector<8x128xf32>
    %c0_82 = arith.constant 0 : index
    %c6_83 = arith.constant 6 : index
    %263 = memref.load %arg1[%c0_82, %c6_83] : memref<6x8xf32, #tpu.memory_space<smem>>
    %264 = vector.extract_strided_slice %0 {offsets = [0, 0, 0], sizes = [1, 8, 128], strides = [1, 1, 1]} : vector<6x8x128xf32> to vector<1x8x128xf32>
    %265 = vector.shape_cast %264 : vector<1x8x128xf32> to vector<8x128xf32>
    %266 = vector.broadcast %263 : f32 to vector<8x128xf32>
    %267 = arith.mulf %266, %265 : vector<8x128xf32>
    %268 = arith.addf %262, %267 : vector<8x128xf32>
    %c1_84 = arith.constant 1 : index
    %c6_85 = arith.constant 6 : index
    %269 = memref.load %arg1[%c1_84, %c6_85] : memref<6x8xf32, #tpu.memory_space<smem>>
    %270 = vector.extract_strided_slice %0 {offsets = [1, 0, 0], sizes = [1, 8, 128], strides = [1, 1, 1]} : vector<6x8x128xf32> to vector<1x8x128xf32>
    %271 = vector.shape_cast %270 : vector<1x8x128xf32> to vector<8x128xf32>
    %272 = vector.broadcast %269 : f32 to vector<8x128xf32>
    %273 = arith.mulf %272, %271 : vector<8x128xf32>
    %274 = arith.addf %268, %273 : vector<8x128xf32>
    %c2_86 = arith.constant 2 : index
    %c6_87 = arith.constant 6 : index
    %275 = memref.load %arg1[%c2_86, %c6_87] : memref<6x8xf32, #tpu.memory_space<smem>>
    %276 = vector.extract_strided_slice %0 {offsets = [2, 0, 0], sizes = [1, 8, 128], strides = [1, 1, 1]} : vector<6x8x128xf32> to vector<1x8x128xf32>
    %277 = vector.shape_cast %276 : vector<1x8x128xf32> to vector<8x128xf32>
    %278 = vector.broadcast %275 : f32 to vector<8x128xf32>
    %279 = arith.mulf %278, %277 : vector<8x128xf32>
    %280 = arith.addf %274, %279 : vector<8x128xf32>
    %c3_88 = arith.constant 3 : index
    %c6_89 = arith.constant 6 : index
    %281 = memref.load %arg1[%c3_88, %c6_89] : memref<6x8xf32, #tpu.memory_space<smem>>
    %282 = vector.extract_strided_slice %0 {offsets = [3, 0, 0], sizes = [1, 8, 128], strides = [1, 1, 1]} : vector<6x8x128xf32> to vector<1x8x128xf32>
    %283 = vector.shape_cast %282 : vector<1x8x128xf32> to vector<8x128xf32>
    %284 = vector.broadcast %281 : f32 to vector<8x128xf32>
    %285 = arith.mulf %284, %283 : vector<8x128xf32>
    %286 = arith.addf %280, %285 : vector<8x128xf32>
    %c4_90 = arith.constant 4 : index
    %c6_91 = arith.constant 6 : index
    %287 = memref.load %arg1[%c4_90, %c6_91] : memref<6x8xf32, #tpu.memory_space<smem>>
    %288 = vector.extract_strided_slice %0 {offsets = [4, 0, 0], sizes = [1, 8, 128], strides = [1, 1, 1]} : vector<6x8x128xf32> to vector<1x8x128xf32>
    %289 = vector.shape_cast %288 : vector<1x8x128xf32> to vector<8x128xf32>
    %290 = vector.broadcast %287 : f32 to vector<8x128xf32>
    %291 = arith.mulf %290, %289 : vector<8x128xf32>
    %292 = arith.addf %286, %291 : vector<8x128xf32>
    %c5_92 = arith.constant 5 : index
    %c6_93 = arith.constant 6 : index
    %293 = memref.load %arg1[%c5_92, %c6_93] : memref<6x8xf32, #tpu.memory_space<smem>>
    %294 = vector.extract_strided_slice %0 {offsets = [5, 0, 0], sizes = [1, 8, 128], strides = [1, 1, 1]} : vector<6x8x128xf32> to vector<1x8x128xf32>
    %295 = vector.shape_cast %294 : vector<1x8x128xf32> to vector<8x128xf32>
    %296 = vector.broadcast %293 : f32 to vector<8x128xf32>
    %297 = arith.mulf %296, %295 : vector<8x128xf32>
    %298 = arith.addf %292, %297 : vector<8x128xf32>
    %c6_94 = arith.constant 6 : index
    %299 = memref.load %arg3[%c6_94] : memref<8xf32, #tpu.memory_space<smem>>
    %300 = math.tanh %298 : vector<8x128xf32>
    %301 = vector.broadcast %299 : f32 to vector<8x128xf32>
    %302 = arith.mulf %301, %300 : vector<8x128xf32>
    %303 = arith.addf %260, %302 : vector<8x128xf32>
    %c7 = arith.constant 7 : index
    %304 = memref.load %arg2[%c7] : memref<8xf32, #tpu.memory_space<smem>>
    %305 = vector.broadcast %304 : f32 to vector<8x128xf32>
    %c0_95 = arith.constant 0 : index
    %c7_96 = arith.constant 7 : index
    %306 = memref.load %arg1[%c0_95, %c7_96] : memref<6x8xf32, #tpu.memory_space<smem>>
    %307 = vector.extract_strided_slice %0 {offsets = [0, 0, 0], sizes = [1, 8, 128], strides = [1, 1, 1]} : vector<6x8x128xf32> to vector<1x8x128xf32>
    %308 = vector.shape_cast %307 : vector<1x8x128xf32> to vector<8x128xf32>
    %309 = vector.broadcast %306 : f32 to vector<8x128xf32>
    %310 = arith.mulf %309, %308 : vector<8x128xf32>
    %311 = arith.addf %305, %310 : vector<8x128xf32>
    %c1_97 = arith.constant 1 : index
    %c7_98 = arith.constant 7 : index
    %312 = memref.load %arg1[%c1_97, %c7_98] : memref<6x8xf32, #tpu.memory_space<smem>>
    %313 = vector.extract_strided_slice %0 {offsets = [1, 0, 0], sizes = [1, 8, 128], strides = [1, 1, 1]} : vector<6x8x128xf32> to vector<1x8x128xf32>
    %314 = vector.shape_cast %313 : vector<1x8x128xf32> to vector<8x128xf32>
    %315 = vector.broadcast %312 : f32 to vector<8x128xf32>
    %316 = arith.mulf %315, %314 : vector<8x128xf32>
    %317 = arith.addf %311, %316 : vector<8x128xf32>
    %c2_99 = arith.constant 2 : index
    %c7_100 = arith.constant 7 : index
    %318 = memref.load %arg1[%c2_99, %c7_100] : memref<6x8xf32, #tpu.memory_space<smem>>
    %319 = vector.extract_strided_slice %0 {offsets = [2, 0, 0], sizes = [1, 8, 128], strides = [1, 1, 1]} : vector<6x8x128xf32> to vector<1x8x128xf32>
    %320 = vector.shape_cast %319 : vector<1x8x128xf32> to vector<8x128xf32>
    %321 = vector.broadcast %318 : f32 to vector<8x128xf32>
    %322 = arith.mulf %321, %320 : vector<8x128xf32>
    %323 = arith.addf %317, %322 : vector<8x128xf32>
    %c3_101 = arith.constant 3 : index
    %c7_102 = arith.constant 7 : index
    %324 = memref.load %arg1[%c3_101, %c7_102] : memref<6x8xf32, #tpu.memory_space<smem>>
    %325 = vector.extract_strided_slice %0 {offsets = [3, 0, 0], sizes = [1, 8, 128], strides = [1, 1, 1]} : vector<6x8x128xf32> to vector<1x8x128xf32>
    %326 = vector.shape_cast %325 : vector<1x8x128xf32> to vector<8x128xf32>
    %327 = vector.broadcast %324 : f32 to vector<8x128xf32>
    %328 = arith.mulf %327, %326 : vector<8x128xf32>
    %329 = arith.addf %323, %328 : vector<8x128xf32>
    %c4_103 = arith.constant 4 : index
    %c7_104 = arith.constant 7 : index
    %330 = memref.load %arg1[%c4_103, %c7_104] : memref<6x8xf32, #tpu.memory_space<smem>>
    %331 = vector.extract_strided_slice %0 {offsets = [4, 0, 0], sizes = [1, 8, 128], strides = [1, 1, 1]} : vector<6x8x128xf32> to vector<1x8x128xf32>
    %332 = vector.shape_cast %331 : vector<1x8x128xf32> to vector<8x128xf32>
    %333 = vector.broadcast %330 : f32 to vector<8x128xf32>
    %334 = arith.mulf %333, %332 : vector<8x128xf32>
    %335 = arith.addf %329, %334 : vector<8x128xf32>
    %c5_105 = arith.constant 5 : index
    %c7_106 = arith.constant 7 : index
    %336 = memref.load %arg1[%c5_105, %c7_106] : memref<6x8xf32, #tpu.memory_space<smem>>
    %337 = vector.extract_strided_slice %0 {offsets = [5, 0, 0], sizes = [1, 8, 128], strides = [1, 1, 1]} : vector<6x8x128xf32> to vector<1x8x128xf32>
    %338 = vector.shape_cast %337 : vector<1x8x128xf32> to vector<8x128xf32>
    %339 = vector.broadcast %336 : f32 to vector<8x128xf32>
    %340 = arith.mulf %339, %338 : vector<8x128xf32>
    %341 = arith.addf %335, %340 : vector<8x128xf32>
    %c7_107 = arith.constant 7 : index
    %342 = memref.load %arg3[%c7_107] : memref<8xf32, #tpu.memory_space<smem>>
    %343 = math.tanh %341 : vector<8x128xf32>
    %344 = vector.broadcast %342 : f32 to vector<8x128xf32>
    %345 = arith.mulf %344, %343 : vector<8x128xf32>
    %346 = arith.addf %303, %345 : vector<8x128xf32>
    %c0_108 = arith.constant 0 : index
    %c0_109 = arith.constant 0 : index
    %347 = vector.load %arg6[%c0_108, %c0_109] : memref<8x128xf32, #tpu.memory_space<vmem>>, vector<8x128xf32>
    tpu.vector_store %arg6[%c0_108, %c0_109], %346 {strides = array<i32>} : memref<8x128xf32, #tpu.memory_space<vmem>>, vector<8x128xf32>,
    return
  }
  func.func @transform_0(%arg0: i32) -> (i32, i32) {
    %c0_i32 = arith.constant 0 : i32
    %c0_i32_0 = arith.constant 0 : i32
    %c0_i32_1 = arith.constant 0 : i32
    return %c0_i32, %c0_i32_0 : i32, i32
  }
  func.func @transform_1(%arg0: i32) -> i32 {
    %c0_i32 = arith.constant 0 : i32
    %c0_i32_0 = arith.constant 0 : i32
    return %c0_i32 : i32
  }
  func.func @transform_2(%arg0: i32) -> i32 {
    %c0_i32 = arith.constant 0 : i32
    %c0_i32_0 = arith.constant 0 : i32
    return %c0_i32 : i32
  }
  func.func @transform_3(%arg0: i32) -> i32 {
    %c0_i32 = arith.constant 0 : i32
    %c0_i32_0 = arith.constant 0 : i32
    return %c0_i32 : i32
  }
  func.func @transform_4(%arg0: i32) -> (i32, i32, i32) {
    %c0_i32 = arith.constant 0 : i32
    %c0_i32_0 = arith.constant 0 : i32
    %c0_i32_1 = arith.constant 0 : i32
    return %c0_i32, %arg0, %c0_i32_0 : i32, i32, i32
  }
  func.func @transform_5(%arg0: i32) -> (i32, i32) {
    %c0_i32 = arith.constant 0 : i32
    %c0_i32_0 = arith.constant 0 : i32
    return %arg0, %c0_i32 : i32, i32
  }
}

</mosaic_0001>

<bundles_post_ra>
// kernel: baseline_spiral_classifier.1
= control target key start
LH: loop header
LB: loop body
LE: loop exit
PB: predicated region body
PF: predicated region fallthrough
CT: control target
= control target key end

     0   :  { %11 = vsyncpa [#allocation5], 0  ;;  %s787_s0 = inlined_call_operand.vmem [shape: f32[6,8], index: 0, kind: input, shape index: {}]   ;;  %s788_s1 = inlined_call_operand.vmem [shape: f32[8], index: 1, kind: input, shape index: {}]   ;;  %s789_s2 = inlined_call_operand.vmem [shape: f32[8], index: 2, kind: input, shape index: {}]   ;;  %s790_s3 = inlined_call_operand.<no memory space> [shape: f32[1], index: 3, kind: input, shape index: {}]   ;;  %s791_s4 = inlined_call_operand.vmem [shape: f32[6,8,128], index: 4, kind: input, shape index: {}]   ;;  %s792_s5 = inlined_call_operand.hbm [shape: f32[8,128], index: 5, kind: output, shape index: {}]  }
   0x1   :  { %12 = vsyncpa [#allocation7], 0  ;;  %s30_s20 = sshll.u32 %s788_s1, 4  ;;  %s31_s20 = int_to_ptr.vmem [resolvable:$true] %s30_s20 }
   0x2   :  { %13 = vsyncpa [#allocation4], 0  ;;  %s20_s23 = sshll.u32 %s787_s0, 4  ;;  %s412_s24 = scalar_lea.vmem %s31_s20, 16  ;;  %s21_s23 = int_to_ptr.vmem [resolvable:$true] %s20_s23 }
   0x3   :  { %p413_p0 = scmp.ne.s32.totalorder %s31_s20, %s412_s24  ;;  %p417_p1 = scmp.lt.s32.totalorder %s31_s20, %s31_s20 }
   0x4   :  { %p418_p2 = scmp.lt.s32.totalorder %s412_s24, %s412_s24 }
   0x6   :  { %p419_p3 = por %p418_p2, %p417_p1 }
   0x8   :  { %p420_p4 = pnand %p419_p3, %p413_p0 }
   0xa   :  { %423 = shalt.err (!%p420_p4)
}
   0xb   :  { %s476_s25 = smov [#allocation6]   ;;  %s424_s26 = scalar_lea.vmem %s21_s23, 128 }
   0xc   :  { %33 = dma.vmem_to_smem %s31_s20, 16, %s476_s25, [#allocation7]  }
   0xd   :  { %p425_p5 = scmp.ne.s32.totalorder %s21_s23, %s424_s26  ;;  %p429_p6 = scmp.lt.s32.totalorder %s21_s23, %s21_s23 }
   0xe   :  { %p430_p7 = scmp.lt.s32.totalorder %s424_s26, %s424_s26 }
  0x10   :  { %p431_p8 = por %p430_p7, %p429_p6 }
  0x12   :  { %p432_p9 = pnand %p431_p8, %p425_p5 }
  0x14   :  { %435 = shalt.err (!%p432_p9)
}
  0x15   :  { %s477_s1 = smov [#allocation3]   ;;  %s40_s28 = sshll.u32 %s789_s2, 4  ;;  %s41_s28 = int_to_ptr.vmem [resolvable:$true] %s40_s28 }
  0x16   :  { %23 = dma.vmem_to_smem %s21_s23, 128, %s477_s1, [#allocation5]  }
  0x17   :  { %s436_s29 = scalar_lea.vmem %s41_s28, 16  ;;  %p441_p11 = scmp.lt.s32.totalorder %s41_s28, %s41_s28 }
  0x18   :  { %p437_p10 = scmp.ne.s32.totalorder %s41_s28, %s436_s29  ;;  %p442_p12 = scmp.lt.s32.totalorder %s436_s29, %s436_s29 }
  0x1a   :  { %p443_p13 = por %p442_p12, %p441_p11 }
  0x1c   :  { %p444_p0 = pnand %p443_p13, %p437_p10 }
  0x1e   :  { %447 = shalt.err (!%p444_p0)
}
  0x1f   :  { %s478_s30 = smov [#allocation8]  }
  0x20   :  { %43 = dma.vmem_to_smem %s41_s28, 16, %s478_s30, [#allocation7]  }
  0x21   :  { %470 = dma.done.wait [#allocation5], 128  }
  0x22   :  { %471 = vsyncadd [#allocation5], 4294967168 }
  0x23   :  { %472 = dma.done.wait [#allocation7], 32  }
  0x24   :  { %473 = vsyncadd [#allocation7], 4294967264 }
  0x25   :  { %57 = sfence }
  0x26   :  { %s66_s6 = sld [smem:[#allocation6]]  ;;  %v528_v0 = vld [vmem:[%s791_s4] sm:$0xff]  ;;  %s530_s14 = sld [smem:[#allocation6 + $0x1]]  ;;  %v537_v1 = vld [vmem:[%s791_s4 + $0x8] sm:$0xff]  ;;  %v546_v2 = vld [vmem:[%s791_s4 + $0x10] sm:$0xff] }
  0x27   :  { %s68_s7 = sld [smem:[#allocation3]]  ;;  %s532_s15 = sld [smem:[#allocation3 + $0x1]]  ;;  %v555_v5 = vld [vmem:[%s791_s4 + $0x18] sm:$0xff]  ;;  %v569_v11 = vld [vmem:[%s791_s4 + $0x20] sm:$0xff]  ;;  %v580_v15 = vld [vmem:[%s791_s4 + $0x28] sm:$0xff] }
  0x28   :  { %s331_s8 = sld [smem:[#allocation3 + $0x80]]  ;;  %s539_s18 = sld [smem:[#allocation3 + $0x81]] }
  0x29   :  { %s332_s9 = sld [smem:[#allocation3 + $0x100]]  ;;  %s541_s19 = sld [smem:[#allocation3 + $0x101]] }
  0x2a   :  { %s519_s2 = sld [smem:[#allocation3 + $0x180]]  ;;  %s548_s22 = sld [smem:[#allocation3 + $0x181]] }
  0x2b   :  { %s521_s10 = sld [smem:[#allocation3 + $0x200]]  ;;  %s550_s23 = sld [smem:[#allocation3 + $0x201]] }
  0x2c   :  { %s523_s11 = sld [smem:[#allocation3 + $0x280]]  ;;  %v67_v3 = vstv %s66_s6  ;;  %s558_s26 = sld [smem:[#allocation3 + $0x281]]  ;;  %v98_v18 = vstv %s530_s14 }
  0x2d   :  { %v69_v4 = vstv %s68_s7  ;;  %s562_s1 = sld [smem:[#allocation6 + $0x2]]  ;;  %v100_v19 = vstv %s532_s15  ;;  %s597_s4 = sld [smem:[#allocation6 + $0x3]] }
  0x2e   :  { %v70_v6 = vmul.f32 %v69_v4, %v528_v0  ;;  %v73_v7 = vstv %s331_s8  ;;  %s564_s0 = sld [smem:[#allocation3 + $0x2]]  ;;  %v101_v21 = vmul.f32 %v100_v19, %v528_v0  ;;  %v104_v22 = vstv %s539_s18  ;;  %s611_s12 = sld [smem:[#allocation3 + $0x103]] }
  0x2f   :  { %v77_v8 = vstv %s332_s9  ;;  %v74_v9 = vmul.f32 %v73_v7, %v537_v1  ;;  %s573_s29 = sld [smem:[#allocation3 + $0x82]]  ;;  %v108_v23 = vstv %s541_s19  ;;  %v105_v25 = vmul.f32 %v104_v22, %v537_v1  ;;  %s613_s13 = sld [smem:[#allocation3 + $0x183]] }
  0x30   :  { %v81_v10 = vstv %s519_s2  ;;  %v71_v12 = vadd.f32 %v70_v6, %v67_v3  ;;  %v78_v13 = vmul.f32 %v77_v8, %v546_v2  ;;  %s575_s30 = sld [smem:[#allocation3 + $0x102]]  ;;  %v112_v26 = vstv %s548_s22  ;;  %s599_s2 = sld [smem:[#allocation3 + $0x3]] }
  0x31   :  { %v85_v14 = vstv %s521_s10  ;;  %v82_v16 = vmul.f32 %v81_v10, %v555_v5  ;;  %s586_s8 = sld [smem:[#allocation3 + $0x182]]  ;;  %v116_v27 = vstv %s550_s23  ;;  %v102_v30 = vadd.f32 %v101_v21, %v98_v18  ;;  %s621_s14 = sld [smem:[#allocation3 + $0x203]] }
  0x32   :  { %v89_v17 = vstv %s523_s11  ;;  %s588_s9 = sld [smem:[#allocation3 + $0x202]]  ;;  %v75_v20 = vadd.f32 %v74_v9, %v71_v12  ;;  %v86_v24 = vmul.f32 %v85_v14, %v569_v11  ;;  %v109_v31 = vmul.f32 %v108_v23, %v546_v2  ;;  %s605_s11 = sld [smem:[#allocation3 + $0x83]] }
  0x33   :  { %v90_v29 = vmul.f32 %v89_v17, %v580_v15  ;;  %s603_s10 = sld [smem:[#allocation3 + $0x282]]  ;;  %v113_v32 = vmul.f32 %v112_v26, %v555_v5  ;;  %v117_v33 = vmul.f32 %v116_v27, %v569_v11  ;;  %v129_v34 = vstv %s562_s1  ;;  %s623_s15 = sld [smem:[#allocation3 + $0x283]] }
  0x34   :  { %v79_v28 = vadd.f32 %v78_v13, %v75_v20  ;;  %v131_v35 = vstv %s564_s0  ;;  %v106_v37 = vadd.f32 %v105_v25, %v102_v30  ;;  %v120_v38 = vstv %s558_s26  ;;  %s626_s16 = sld [smem:[#allocation6 + $0x4]]  ;;  %s637_s20 = sld [smem:[#allocation8]] }
  0x35   :  { %v132_v39 = vmul.f32 %v131_v35, %v528_v0  ;;  %v135_v40 = vstv %s573_s29  ;;  %s628_s17 = sld [smem:[#allocation3 + $0x4]]  ;;  %v121_v48 = vmul.f32 %v120_v38, %v580_v15  ;;  %v160_v55 = vstv %s597_s4  ;;  %s652_s23 = sld [smem:[#allocation6 + $0x5]] }
  0x36   :  { %v83_v36 = vadd.f32 %v82_v16, %v79_v28  ;;  %v139_v41 = vstv %s575_s30  ;;  %v110_v45 = vadd.f32 %v109_v31, %v106_v37  ;;  %v136_v47 = vmul.f32 %v135_v40, %v537_v1  ;;  %s632_s18 = sld [smem:[#allocation3 + $0x84]]  ;;  %s655_s24 = sld [smem:[#allocation3 + $0x5]] }
  0x37   :  { %v143_v42 = vstv %s586_s8  ;;  %v133_v46 = vadd.f32 %v132_v39, %v129_v34  ;;  %v140_v49 = vmul.f32 %v139_v41, %v546_v2  ;;  %s634_s19 = sld [smem:[#allocation3 + $0x104]]  ;;  %v162_v56 = vstv %s599_s2  ;;  %s657_s25 = sld [smem:[#allocation3 + $0x85]] }
  0x38   :  { %v147_v43 = vstv %s588_s9  ;;  %v87_v44 = vadd.f32 %v86_v24, %v83_v36  ;;  %v114_v51 = vadd.f32 %v113_v32, %v110_v45  ;;  %v144_v53 = vmul.f32 %v143_v42, %v555_v5  ;;  %s643_s21 = sld [smem:[#allocation3 + $0x184]]  ;;  %s663_s1 = sld [smem:[#allocation3 + $0x105]] }
  0x39   :  { %v137_v52 = vadd.f32 %v136_v47, %v133_v46  ;;  %v148_v54 = vmul.f32 %v147_v43, %v569_v11  ;;  %v166_v57 = vstv %s605_s11  ;;  %v151_v60 = vstv %s603_s10  ;;  %s650_s22 = sld [smem:[#allocation3 + $0x204]]  ;;  %s667_s0 = sld [smem:[#allocation3 + $0x185]] }
  0x3a   :  { %v91_v50 = vadd.f32 %v90_v29, %v87_v44  ;;  %v118_v58 = vadd.f32 %v117_v33, %v114_v51  ;;  %v163_v61 = vmul.f32 %v162_v56, %v528_v0  ;;  %v167_v62 = vmul.f32 %v166_v57, %v537_v1  ;;  %s661_s26 = sld [smem:[#allocation3 + $0x284]]  ;;  %s669_s27 = sld [smem:[#allocation8 + $0x1]] }
  0x3b   :  { %v141_v59 = vadd.f32 %v140_v49, %v137_v52  ;;  %v170_v63 = vstv %s611_s12  ;;  %v174_v3 = vstv %s613_s13  ;;  %v152_v9 = vmul.f32 %v151_v60, %v580_v15  ;;  %s678_s28 = sld [smem:[#allocation3 + $0x205]]  ;;  %s687_s7 = sld [smem:[#allocation6 + $0x6]] }
  0x3c   :  { %396 = vtanh.f32 %v91_v50  ;;  %v164_v6 = vadd.f32 %v163_v61, %v160_v55  ;;  %v171_v7 = vmul.f32 %v170_v63, %v546_v2  ;;  %v122_v8 = vadd.f32 %v121_v48, %v118_v58  ;;  %s685_s6 = sld [smem:[#allocation3 + $0x285]]  ;;  %s691_s8 = sld [smem:[#allocation3 + $0x6]] }
  0x3d   :  { %v145_v4 = vadd.f32 %v144_v53, %v141_v59  ;;  %v178_v10 = vstv %s621_s14  ;;  %v175_v14 = vmul.f32 %v174_v3, %v555_v5  ;;  %v182_v16 = vstv %s623_s15  ;;  %s693_s9 = sld [smem:[#allocation3 + $0x86]]  ;;  %s710_s11 = sld [smem:[#allocation8 + $0x2]] }
  0x3e   :  { %v168_v13 = vadd.f32 %v167_v62, %v164_v6  ;;  %v191_v17 = vstv %s626_s16  ;;  %v193_v18 = vstv %s628_s17  ;;  %v197_v19 = vstv %s632_s18  ;;  %s698_s4 = sld [smem:[#allocation3 + $0x106]]  ;;  %s718_s13 = sld [smem:[#allocation6 + $0x7]] }
  0x3f   :  { %v149_v12 = vadd.f32 %v148_v54, %v145_v4  ;;  %v201_v20 = vstv %s634_s19  ;;  %v179_v22 = vmul.f32 %v178_v10, %v569_v11  ;;  %v194_v23 = vmul.f32 %v193_v18, %v528_v0  ;;  %s702_s2 = sld [smem:[#allocation3 + $0x186]]  ;;  %s722_s14 = sld [smem:[#allocation3 + $0x7]] }
  0x40   :  { %v172_v21 = vadd.f32 %v171_v7, %v168_v13  ;;  %v198_v24 = vmul.f32 %v197_v19, %v537_v1  ;;  %v65_v25 = vstv %s790_s3  ;;  %v94_v26 = vstv %s637_s20  ;;  %s704_s10 = sld [smem:[#allocation3 + $0x206]]  ;;  %s724_s15 = sld [smem:[#allocation3 + $0x87]] }
  0x41   :  { %398 = vtanh.f32 %v122_v8  ;;  %v205_v27 = vstv %s643_s21  ;;  %v183_v29 = vmul.f32 %v182_v16, %v580_v15  ;;  %v195_v30 = vadd.f32 %v194_v23, %v191_v17  ;;  %s716_s12 = sld [smem:[#allocation3 + $0x286]]  ;;  %s731_s16 = sld [smem:[#allocation3 + $0x107]] }
  0x42   :  { %v176_v28 = vadd.f32 %v175_v14, %v172_v21  ;;  %v202_v31 = vmul.f32 %v201_v20, %v546_v2  ;;  %v153_v32 = vadd.f32 %v152_v9, %v149_v12  ;;  %v206_v33 = vmul.f32 %v205_v27, %v555_v5  ;;  %s733_s17 = sld [smem:[#allocation3 + $0x187]]  ;;  %s743_s19 = sld [smem:[#allocation8 + $0x3]] }
  0x43   :  { %v209_v34 = vstv %s650_s22  ;;  %v222_v35 = vstv %s652_s23  ;;  %v199_v37 = vadd.f32 %v198_v24, %v195_v30  ;;  %v224_v38 = vstv %s655_s24  ;;  %s741_s18 = sld [smem:[#allocation3 + $0x207]]  ;;  %s760_s3 = sld [smem:[#allocation8 + $0x4]] }
  0x44   :  { %v180_v36 = vadd.f32 %v179_v22, %v176_v28  ;;  %v228_v39 = vstv %s657_s25  ;;  %v213_v41 = vstv %s661_s26  ;;  %v225_v42 = vmul.f32 %v224_v38, %v528_v0  ;;  %s752_s22 = sld [smem:[#allocation3 + $0x287]]  ;;  %s375_s23 = sld [smem:[#allocation8 + $0x5]] }
  0x45   :  { %v229_v43 = vmul.f32 %v228_v39, %v537_v1  ;;  %v232_v44 = vstv %s663_s1  ;;  %v203_v46 = vadd.f32 %v202_v31, %v199_v37  ;;  %v210_v47 = vmul.f32 %v209_v34, %v569_v11  ;;  %s383_s24 = sld [smem:[#allocation8 + $0x6]]  ;;  %s391_s25 = sld [smem:[#allocation8 + $0x7]] }
  0x46   :  { %v397_v40 = vpop.eup %396  ;;  %v184_v45 = vadd.f32 %v183_v29, %v180_v36  ;;  %v236_v48 = vstv %s667_s0  ;;  %v125_v49 = vstv %s669_s27  ;;  %400 = vtanh.f32 %v153_v32  ;;  %s479_s26 = smov [#allocation9]  }
  0x47   :  { %v226_v50 = vadd.f32 %v225_v42, %v222_v35  ;;  %v233_v51 = vmul.f32 %v232_v44, %v546_v2  ;;  %v95_v52 = vmul.f32 %v397_v40, %v94_v26  ;;  %v207_v53 = vadd.f32 %v206_v33, %v203_v46  ;;  %s321_s1 = sshll.u32 %s479_s26, 4  ;;  %s322_s1 = int_to_ptr.vmem [resolvable:$true] %s321_s1 }
  0x48   :  { %v214_v54 = vmul.f32 %v213_v41, %v580_v15  ;;  %v240_v55 = vstv %s678_s28  ;;  %402 = vtanh.f32 %v184_v45  ;;  %v237_v57 = vmul.f32 %v236_v48, %v555_v5  ;;  %s448_s0 = scalar_lea.vmem %s322_s1, 128  ;;  %p453_p2 = scmp.lt.s32.totalorder %s322_s1, %s322_s1 }
  0x49   :  { %v230_v56 = vadd.f32 %v229_v43, %v226_v50  ;;  %v244_v58 = vstv %s685_s6  ;;  %v211_v59 = vadd.f32 %v210_v47, %v207_v53  ;;  %v253_v60 = vstv %s687_s7  ;;  %p449_p1 = scmp.ne.s32.totalorder %s322_s1, %s448_s0  ;;  %p454_p3 = scmp.lt.s32.totalorder %s448_s0, %s448_s0 }
  0x4a   :  { %v255_v61 = vstv %s691_s8  ;;  %v259_v62 = vstv %s693_s9  ;;  %v241_v4 = vmul.f32 %v240_v55, %v569_v11  ;;  %v263_v9 = vstv %s698_s4 }
  0x4b   :  { %v399_v63 = vpop.eup %398  ;;  %v234_v3 = vadd.f32 %v233_v51, %v230_v56  ;;  %v256_v6 = vmul.f32 %v255_v61, %v528_v0  ;;  %v260_v7 = vmul.f32 %v259_v62, %v537_v1  ;;  %v215_v8 = vadd.f32 %v214_v54, %v211_v59  ;;  %p455_p4 = por %p454_p3, %p453_p2 }
  0x4c   :  { %v267_v10 = vstv %s702_s2  ;;  %v271_v12 = vstv %s704_s10  ;;  %v245_v14 = vmul.f32 %v244_v58, %v580_v15  ;;  %v264_v17 = vmul.f32 %v263_v9, %v546_v2 }
  0x4d   :  { %v238_v13 = vadd.f32 %v237_v57, %v234_v3  ;;  %v257_v16 = vadd.f32 %v256_v6, %v253_v60  ;;  %v96_v18 = vadd.f32 %v95_v52, %v65_v25  ;;  %v126_v19 = vmul.f32 %v399_v63, %v125_v49  ;;  %p456_p5 = pnand %p455_p4, %p449_p1 }
  0x4e   :  { %v156_v20 = vstv %s710_s11  ;;  %404 = vtanh.f32 %v215_v8  ;;  %v268_v23 = vmul.f32 %v267_v10, %v555_v5  ;;  %v272_v24 = vmul.f32 %v271_v12, %v569_v11 }
  0x4f   :  { %v242_v21 = vadd.f32 %v241_v4, %v238_v13  ;;  %v261_v22 = vadd.f32 %v260_v7, %v257_v16  ;;  %v275_v26 = vstv %s716_s12  ;;  %v284_v27 = vstv %s718_s13 }
  0x50   :  { %v286_v28 = vstv %s722_s14  ;;  %v290_v29 = vstv %s724_s15  ;;  %v401_v30 = vpop.eup %400  ;;  %v294_v34 = vstv %s731_s16  ;;  %v298_v35 = vstv %s733_s17 }
  0x51   :  { %v246_v25 = vadd.f32 %v245_v14, %v242_v21  ;;  %v265_v31 = vadd.f32 %v264_v17, %v261_v22  ;;  %v287_v32 = vmul.f32 %v286_v28, %v528_v0  ;;  %v291_v33 = vmul.f32 %v290_v29, %v537_v1 }
  0x52   :  { %v403_v36 = vpop.eup %402  ;;  %v276_v38 = vmul.f32 %v275_v26, %v580_v15  ;;  %v127_v40 = vadd.f32 %v126_v19, %v96_v18  ;;  %v157_v41 = vmul.f32 %v401_v30, %v156_v20  ;;  %v295_v42 = vmul.f32 %v294_v34, %v546_v2 }
  0x53   :  { %406 = vtanh.f32 %v246_v25  ;;  %v269_v37 = vadd.f32 %v268_v23, %v265_v31  ;;  %v288_v39 = vadd.f32 %v287_v32, %v284_v27  ;;  %v302_v43 = vstv %s741_s18 }
  0x54   :  { %v187_v44 = vstv %s743_s19  ;;  %v299_v1 = vmul.f32 %v298_v35, %v555_v5  ;;  %v306_v46 = vstv %s752_s22  ;;  %v303_v49 = vmul.f32 %v302_v43, %v569_v11 }
  0x55   :  { %v273_v0 = vadd.f32 %v272_v24, %v269_v37  ;;  %v292_v45 = vadd.f32 %v291_v33, %v288_v39  ;;  %v158_v51 = vadd.f32 %v157_v41, %v127_v40  ;;  %v188_v52 = vmul.f32 %v403_v36, %v187_v44 }
  0x56   :  { %v218_v53 = vstv %s760_s3  ;;  %v307_v2 = vmul.f32 %v306_v46, %v580_v15  ;;  %v249_v59 = vstv %s375_s23  ;;  %v280_v11 = vstv %s383_s24 }
  0x57   :  { %v277_v47 = vadd.f32 %v276_v38, %v273_v0  ;;  %v296_v48 = vadd.f32 %v295_v42, %v292_v45  ;;  %v189_v56 = vadd.f32 %v188_v52, %v158_v51  ;;  %v311_v4 = vstv %s391_s25 }
  0x58   :  { %v405_v50 = vpop.eup %404 }
  0x59   :  { %408 = vtanh.f32 %v277_v47  ;;  %v300_v54 = vadd.f32 %v299_v1, %v296_v48  ;;  %v219_v57 = vmul.f32 %v405_v50, %v218_v53 }
  0x5b   :  { %v304_v55 = vadd.f32 %v303_v49, %v300_v54  ;;  %v220_v60 = vadd.f32 %v219_v57, %v189_v56 }
  0x5d   :  { %v407_v58 = vpop.eup %406  ;;  %v308_v5 = vadd.f32 %v307_v2, %v304_v55 }
  0x5e   :  { %v250_v61 = vmul.f32 %v407_v58, %v249_v59 }
  0x5f   :  { %410 = vtanh.f32 %v308_v5 }
  0x60   :  { %v251_v63 = vadd.f32 %v250_v61, %v220_v60 }
  0x63   :  { %v409_v62 = vpop.eup %408 }
  0x64   :  { %v281_v3 = vmul.f32 %v409_v62, %v280_v11 }
  0x66   :  { %v282_v6 = vadd.f32 %v281_v3, %v251_v63 }
  0x69   :  { %v411_v7 = vpop.eup %410 }
  0x6a   :  { %v312_v15 = vmul.f32 %v411_v7, %v311_v4 }
  0x6c   :  { %v313_v8 = vadd.f32 %v312_v15, %v282_v6 }
  0x6e   :  { %314 = vst [vmem:[#allocation9] sm:$0xff] %v313_v8 }
  0x6f   :  { %459 = shalt.err (!%p456_p5)
}
  0x70   :  { %s460_s29 = scalar_lea.hbm %s792_s5, 128 }
  0x71   :  { %p461_p6 = scmp.ne.s32.totalorder %s792_s5, %s460_s29  ;;  %p464_p7 = scmp.lt.u32.totalorder %s460_s29, %s792_s5 }
  0x73   :  { %p466_p8 = pnand %p464_p7, %p461_p6 }
  0x75   :  { %469 = shalt.err (!%p466_p8)
}
  0x76   :  { %324 = dma.vmem_to_hbm [thread:$0]  %s322_s1, 128, %s792_s5, [#allocation4]  }
  0x77   :  { %474 = dma.done.wait [#allocation4], 128  }
  0x78   :  { %475 = vsyncadd [#allocation4], 4294967168 }
  0x79   :  { %328 = vsyncpa [#allocation4], 1 }
  0x7a   :  { %329 = vsyncpa [#allocation5], 1 }
  0x7b   :  { %330 = vsyncpa [#allocation7], 1 }

</bundles_post_ra>
